<compile_context>
chip_gen: v6e
topology: v6e:2x2x1
jax: 0.10.0
libtpu: 0.0.40
codegen_flags: <defaults>
</compile_context>

<pallas_src>
import jax
import jax.numpy as jnp
from jax import lax
from jax.experimental import pallas as pl
from jax.experimental.pallas import tpu as pltpu


def _logreg_kernel(x_ref, w_ref, b_ref, o_ref):
    # x_ref: (TB, K); w_ref: (C_pad, K); b_ref: (1, C_pad); o_ref: (TB, C_pad)
    # MXU matmul contracting K with K (no transpose copy needed in the wrapper).
    logits = lax.dot_general(
        x_ref[...], w_ref[...],
        dimension_numbers=(((1,), (1,)), ((), ())),
        preferred_element_type=jnp.float32)
    logits = logits + b_ref[...]                 # (TB, C_pad) + (1, C_pad) broadcast
    o_ref[...] = jax.nn.sigmoid(logits).astype(o_ref.dtype)


def _round_up(n, m):
    return ((n + m - 1) // m) * m


def _pick_block_b(B, K, C_pad, itemsize, budget_bytes):
    """Largest batch tile such that resident weight + double-buffered x/out tiles
    stay within the VMEM budget (keeps pipelining intact on v7x's 64 MiB VMEM)."""
    resident = C_pad * K * itemsize + C_pad * 4          # weight + bias (f32)
    per_row = 2 * (K * itemsize + C_pad * 4)             # 2 bufs of x row + out row
    tb = (budget_bytes - resident) // max(per_row, 1)
    tb = int(max(8, min(512, tb)))
    tb = min(tb, B)
    if tb < B:
        tb = max(8, (tb // 8) * 8)                        # keep sublane alignment
    return tb


def logistic_regression(x, weight, bias, *, block_b=None, compute_dtype=None,
                        vmem_limit_bytes=64 * 1024 * 1024):
    """x: (B, input_size); weight: (num_classes, input_size); bias: (num_classes,).

    Returns sigmoid(x @ weight.T + bias), shape (B, num_classes), float32.
    """
    B, K = x.shape
    C = weight.shape[0]

    if compute_dtype is not None:                         # optional bf16 path (v6e/v7x)
        x = x.astype(compute_dtype)
        weight = weight.astype(compute_dtype)

    # Lane-dense output: pad class dim to a multiple of 128. Padded rows of the
    # weight / bias are zero -> sigmoid(0) = 0.5 in padded columns, sliced off below.
    # TODO(synk): for a real model, store the weight pre-padded at init instead of
    # padding per call, and tile K with an accumulator if K*C_pad exceeds VMEM.
    C_pad = _round_up(max(C, 128), 128)
    w_pad = jnp.pad(weight, ((0, C_pad - C), (0, 0)))
    b_pad = jnp.pad(bias.astype(jnp.float32), (0, C_pad - C)).reshape(1, C_pad)

    itemsize = jnp.dtype(x.dtype).itemsize
    if block_b is None:
        block_b = _pick_block_b(B, K, C_pad, itemsize, vmem_limit_bytes // 2)
    grid_b = pl.cdiv(B, block_b)

    cost = pl.CostEstimate(
        flops=2 * B * K * C_pad,
        transcendentals=B * C_pad,
        bytes_accessed=itemsize * (B * K + C_pad * K) + 4 * (C_pad + B * C_pad))

    out_padded = pl.pallas_call(
        _logreg_kernel,
        out_shape=jax.ShapeDtypeStruct((B, C_pad), jnp.float32),
        grid_spec=pltpu.PrefetchScalarGridSpec(
            num_scalar_prefetch=0,
            grid=(grid_b,),
            in_specs=[
                pl.BlockSpec((block_b, K), lambda i: (i, 0)),   # x: streamed per tile
                pl.BlockSpec((C_pad, K), lambda i: (0, 0)),     # weight: VMEM-resident
                pl.BlockSpec((1, C_pad), lambda i: (0, 0)),     # bias: VMEM-resident
            ],
            out_specs=pl.BlockSpec((block_b, C_pad), lambda i: (i, 0)),
        ),
        compiler_params=pltpu.CompilerParams(
            dimension_semantics=("parallel",),
            vmem_limit_bytes=vmem_limit_bytes),
        cost_estimate=cost,
    )(x, w_pad, b_pad)

    return out_padded[:, :C]


if __name__ == "__main__":
    key = jax.random.PRNGKey(0)
    B, input_size, num_classes = 8, 32, 16

    kx, kw, kb = jax.random.split(key, 3)
    x = jax.random.normal(kx, (B, input_size), dtype=jnp.float32)
    # Deterministic init mimicking nn.Linear's uniform(-1/sqrt(in), 1/sqrt(in))
    bound = 1.0 / jnp.sqrt(jnp.float32(input_size))
    weight = jax.random.uniform(kw, (num_classes, input_size),
                                minval=-bound, maxval=bound, dtype=jnp.float32)
    bias = jax.random.uniform(kb, (num_classes,),
                              minval=-bound, maxval=bound, dtype=jnp.float32)

    out = logistic_regression(x, weight, bias)
    jax.block_until_ready(out)

    # Reference check in plain JAX
    ref = jax.nn.sigmoid(x @ weight.T + bias)
    assert out.shape == (B, num_classes)
    assert jnp.allclose(out, ref, atol=1e-5, rtol=1e-5)

    print("KERNEL_OK")
</pallas_src>

<mosaic_0001>
module attributes {stable_mosaic.version = 11 : i64} {
  func.func @_logreg_kernel(%arg0: i32, %arg1: memref<8x32xf32, #tpu.memory_space<vmem>>, %arg2: memref<128x32xf32, #tpu.memory_space<vmem>>, %arg3: memref<1x128xf32, #tpu.memory_space<vmem>>, %arg4: memref<8x128xf32, #tpu.memory_space<vmem>>) attributes {dimension_semantics = [#tpu.dimension_semantics<parallel>], iteration_bounds = array<i64: 1>, scalar_prefetch = 0 : i64, scratch_operands = 0 : i64, tpu.core_type = #tpu.core_type<tc>, window_params = [{transform_indices = @transform_0, window_bounds = array<i64: 8, 32>}, {pipeline_mode = #tpu.pipeline_mode<synchronous>, transform_indices = @transform_1, window_bounds = array<i64: 128, 32>}, {pipeline_mode = #tpu.pipeline_mode<synchronous>, transform_indices = @transform_2, window_bounds = array<i64: 1, 128>}, {transform_indices = @transform_3, window_bounds = array<i64: 8, 128>}]} {
    %c0 = arith.constant 0 : index
    %c0_0 = arith.constant 0 : index
    %0 = vector.load %arg1[%c0, %c0_0] : memref<8x32xf32, #tpu.memory_space<vmem>>, vector<8x32xf32>
    %c0_1 = arith.constant 0 : index
    %c0_2 = arith.constant 0 : index
    %1 = vector.load %arg2[%c0_1, %c0_2] : memref<128x32xf32, #tpu.memory_space<vmem>>, vector<128x32xf32>
    %cst = arith.constant dense<0.000000e+00> : vector<8x128xf32>
    %2 = tpu.matmul %0, %1, %cst {dimension_numbers = #tpu.dot_dimension_numbers<[1], [1], [0], [0], [0, 0, 1, 0], [], []>} : vector<8x32xf32>, vector<128x32xf32>, vector<8x128xf32> -> vector<8x128xf32>
    %c0_3 = arith.constant 0 : index
    %c0_4 = arith.constant 0 : index
    %3 = vector.load %arg3[%c0_3, %c0_4] : memref<1x128xf32, #tpu.memory_space<vmem>>, vector<1x128xf32>
    %4 = vector.broadcast %3 : vector<1x128xf32> to vector<8x128xf32>
    %5 = arith.addf %2, %4 : vector<8x128xf32>
    %6 = arith.negf %5 : vector<8x128xf32>
    %7 = math.exp %6 : vector<8x128xf32>
    %cst_5 = arith.constant 1.000000e+00 : f32
    %8 = vector.broadcast %cst_5 : f32 to vector<8x128xf32>
    %9 = arith.addf %8, %7 : vector<8x128xf32>
    %10 = arith.divf %8, %9 : vector<8x128xf32>
    %c0_6 = arith.constant 0 : index
    %c0_7 = arith.constant 0 : index
    %11 = vector.load %arg4[%c0_6, %c0_7] : memref<8x128xf32, #tpu.memory_space<vmem>>, vector<8x128xf32>
    tpu.vector_store %arg4[%c0_6, %c0_7], %10 {strides = array<i32>} : memref<8x128xf32, #tpu.memory_space<vmem>>, vector<8x128xf32>,
    return
  }
  func.func @transform_0(%arg0: i32) -> (i32, i32) {
    %c0_i32 = arith.constant 0 : i32
    %c0_i32_0 = arith.constant 0 : i32
    return %arg0, %c0_i32 : i32, i32
  }
  func.func @transform_1(%arg0: i32) -> (i32, i32) {
    %c0_i32 = arith.constant 0 : i32
    %c0_i32_0 = arith.constant 0 : i32
    %c0_i32_1 = arith.constant 0 : i32
    return %c0_i32, %c0_i32_0 : i32, i32
  }
  func.func @transform_2(%arg0: i32) -> (i32, i32) {
    %c0_i32 = arith.constant 0 : i32
    %c0_i32_0 = arith.constant 0 : i32
    %c0_i32_1 = arith.constant 0 : i32
    return %c0_i32, %c0_i32_0 : i32, i32
  }
  func.func @transform_3(%arg0: i32) -> (i32, i32) {
    %c0_i32 = arith.constant 0 : i32
    %c0_i32_0 = arith.constant 0 : i32
    return %arg0, %c0_i32 : i32, i32
  }
}

</mosaic_0001>

<bundles_post_ra>
// kernel: tpu_custom_call.1
= control target key start
LH: loop header
LB: loop body
LE: loop exit
PB: predicated region body
PF: predicated region fallthrough
CT: control target
= control target key end

     0   :  { %vm39_vm0 = vcmask 261120   ;;  %v282_v1 = vmov 0.0   ;;  %vm283_vm1 = vmmov 0   ;;  %s379_s0 = inlined_call_operand.vmem [shape: f32[8,32], index: 0, kind: input, shape index: {}]   ;;  %s380_s1 = inlined_call_operand.vmem [shape: f32[128,32], index: 1, kind: input, shape index: {}]   ;;  %s381_s2 = inlined_call_operand.vmem [shape: f32[1,128], index: 2, kind: input, shape index: {}]   ;;  %s382_s3 = inlined_call_operand.hbm [shape: f32[8,128], index: 3, kind: output, shape index: {}]  }
   0x1   :  { %v31_v0 = vld [vmem:[%s380_s1 + $0x78] sm:$0xff]  ;;  %218 = vmatprep.subr.mxu0 %v282_v1  ;;  %250 = vmatprep.mubr.msk.f32.mxu0 %vm283_vm1, %v282_v1  ;;  %v30_v2 = vld [vmem:[%s380_s1 + $0x70] sm:$0xff] }
   0x2   :  { %219 = vmatpush3.xpose.msk.msra.mxu0 %vm39_vm0, %v31_v0 }
   0x3   :  { %220 = vmatprep.subr.mxu0 %v282_v1 }
   0x6   :  { %221 = vmatpush3.xpose.msk.msra.mxu0 %vm39_vm0, %v30_v2 }
   0x7   :  { %8 = vsyncpa [#allocation3], 0  ;;  %222 = vmatprep.subr.mxu0 %v282_v1  ;;  %v29_v3 = vld [vmem:[%s380_s1 + $0x68] sm:$0xff]  ;;  %v28_v4 = vld [vmem:[%s380_s1 + $0x60] sm:$0xff] }
   0x8   :  { %v27_v5 = vld [vmem:[%s380_s1 + $0x58] sm:$0xff]  ;;  %v26_v6 = vld [vmem:[%s380_s1 + $0x50] sm:$0xff]  ;;  %v25_v7 = vld [vmem:[%s380_s1 + $0x48] sm:$0xff] }
   0x9   :  { %v24_v8 = vld [vmem:[%s380_s1 + $0x40] sm:$0xff]  ;;  %v23_v9 = vld [vmem:[%s380_s1 + $0x38] sm:$0xff]  ;;  %v22_v10 = vld [vmem:[%s380_s1 + $0x30] sm:$0xff] }
   0xa   :  { %223 = vmatpush3.xpose.msk.msra.mxu0 %vm39_vm0, %v29_v3  ;;  %v21_v11 = vld [vmem:[%s380_s1 + $0x28] sm:$0xff]  ;;  %v20_v12 = vld [vmem:[%s380_s1 + $0x20] sm:$0xff]  ;;  %v19_v13 = vld [vmem:[%s380_s1 + $0x18] sm:$0xff] }
   0xb   :  { %224 = vmatprep.subr.mxu0 %v282_v1  ;;  %v18_v14 = vld [vmem:[%s380_s1 + $0x10] sm:$0xff]  ;;  %v17_v15 = vld [vmem:[%s380_s1 + $0x8] sm:$0xff]  ;;  %v16_v16 = vld [vmem:[%s380_s1] sm:$0xff]  ;;  %s284_s1 = smov [#allocation2]  }
   0xc   :  { %v15_v17 = vld [vmem:[%s379_s0] sm:$0xff]  ;;  %s174_s21 = sshll.u32 %s284_s1, 4  ;;  %s175_s21 = int_to_ptr.vmem [resolvable:$true] %s174_s21 }
   0xd   :  { %v182_v18 = vld [vmem:[%s381_s2] ss:$0 sm:$0xff]  ;;  %s260_s0 = scalar_lea.vmem %s175_s21, 128  ;;  %p265_p1 = scmp.lt.s32.totalorder %s175_s21, %s175_s21 }
   0xe   :  { %225 = vmatpush3.xpose.msk.msra.mxu0 %vm39_vm0, %v28_v4  ;;  %p261_p0 = scmp.ne.s32.totalorder %s175_s21, %s260_s0  ;;  %p266_p2 = scmp.lt.s32.totalorder %s260_s0, %s260_s0 }
   0xf   :  { %226 = vmatprep.subr.mxu0 %v282_v1 }
  0x10   :  { %p267_p3 = por %p266_p2, %p265_p1 }
  0x12   :  { %227 = vmatpush3.xpose.msk.msra.mxu0 %vm39_vm0, %v27_v5  ;;  %p268_p4 = pnand %p267_p3, %p261_p0 }
  0x13   :  { %228 = vmatprep.subr.mxu0 %v282_v1 }
  0x16   :  { %229 = vmatpush3.xpose.msk.msra.mxu0 %vm39_vm0, %v26_v6 }
  0x17   :  { %230 = vmatprep.subr.mxu0 %v282_v1 }
  0x1a   :  { %231 = vmatpush3.xpose.msk.msra.mxu0 %vm39_vm0, %v25_v7 }
  0x1b   :  { %232 = vmatprep.subr.mxu0 %v282_v1 }
  0x1e   :  { %233 = vmatpush3.xpose.msk.msra.mxu0 %vm39_vm0, %v24_v8 }
  0x1f   :  { %234 = vmatprep.subr.mxu0 %v282_v1 }
  0x22   :  { %235 = vmatpush3.xpose.msk.msra.mxu0 %vm39_vm0, %v23_v9 }
  0x23   :  { %236 = vmatprep.subr.mxu0 %v282_v1 }
  0x26   :  { %237 = vmatpush3.xpose.msk.msra.mxu0 %vm39_vm0, %v22_v10 }
  0x27   :  { %238 = vmatprep.subr.mxu0 %v282_v1 }
  0x2a   :  { %239 = vmatpush3.xpose.msk.msra.mxu0 %vm39_vm0, %v21_v11 }
  0x2b   :  { %240 = vmatprep.subr.mxu0 %v282_v1 }
  0x2e   :  { %241 = vmatpush3.xpose.msk.msra.mxu0 %vm39_vm0, %v20_v12 }
  0x2f   :  { %242 = vmatprep.subr.mxu0 %v282_v1 }
  0x32   :  { %243 = vmatpush3.xpose.msk.msra.mxu0 %vm39_vm0, %v19_v13 }
  0x33   :  { %244 = vmatprep.subr.mxu0 %v282_v1 }
  0x36   :  { %245 = vmatpush3.xpose.msk.msra.mxu0 %vm39_vm0, %v18_v14 }
  0x37   :  { %246 = vmatprep.subr.mxu0 %v282_v1 }
  0x3a   :  { %247 = vmatpush3.xpose.msk.msra.mxu0 %vm39_vm0, %v17_v15 }
  0x3b   :  { %248 = vmatprep.subr.mxu0 %v282_v1 }
  0x3e   :  { %249 = vmatpush3.xpose.msk.msra.mxu0 %vm39_vm0, %v16_v16 }
  0x41   :  { %251 = vmatmul.mubr.msk.f32.vlgmr.msra.gmra.mxu0 %vm39_vm0, %v15_v17 }
 0x101   :  { %v157_v19 = vpop.f32.mrf.mxu0 }
 0x102   :  { %v158_v20 = vadd.f32 %v182_v18, %v157_v19 }
 0x103   :  { %v252_v21 = vpop.f32.mrf.mxu0 }
 0x104   :  { %v200_v22 = vmul.f32 -1.442695, %v158_v20 }
 0x106   :  { %256 = vpow2.f32 %v200_v22 }
 0x113   :  { %v257_v23 = vpop.eup %256 }
 0x114   :  { %v164_v24 = vadd.f32 1.0, %v257_v23 }
 0x116   :  { %258 = vrcp.f32 %v164_v24 }
 0x123   :  { %v259_v25 = vpop.eup %258 }
 0x124   :  { %167 = vst [vmem:[#allocation2] sm:$0xff] %v259_v25 }
 0x125   :  { %271 = shalt.err (!%p268_p4)
}
 0x126   :  { %177 = dma.vmem_to_hbm [thread:$0]  %s175_s21, 128, %s382_s3, [#allocation3]  }
 0x127   :  { %280 = dma.done.wait [#allocation3], 128  }
 0x128   :  { %281 = vsyncadd [#allocation3], 4294967168 }
 0x129   :  { %181 = vsyncpa [#allocation3], 1 }

</bundles_post_ra>
